<compile_context>
chip_gen: v5e
topology: v5e:2x2
jax: 0.10.0
libtpu: 0.0.40
codegen_flags: <defaults>
</compile_context>

<pallas_src>
import jax
import jax.numpy as jnp
from jax.experimental import pallas as pl
from jax.experimental.pallas import tpu as pltpu


def _round_up(x, m):
    return ((x + m - 1) // m) * m


def _cdiv(a, b):
    return -(-a // b)


# ----------------------------------------------------------------------------- kernel
def actor_kernel(ma_ref, x_ref, w1_ref, b1_ref, w2_ref, b2_ref, w3_ref, b3_ref,
                 o_ref):
    max_action = ma_ref[0]                      # SMEM scalar
    cdt = w1_ref.dtype                          # compute dtype (bf16 or f32)

    # In-kernel cast of the raw f32 state tile (VPU work, hidden under DMA).
    x = x_ref[...].astype(cdt)

    # layer 1 + ReLU (MXU matmul, f32 accumulate; f32 bias added to accumulator)
    h1 = jnp.dot(x, w1_ref[...], preferred_element_type=jnp.float32) + b1_ref[...]
    h1 = jnp.maximum(h1, 0.0).astype(cdt)

    # layer 2 + ReLU
    h2 = jnp.dot(h1, w2_ref[...], preferred_element_type=jnp.float32) + b2_ref[...]
    h2 = jnp.maximum(h2, 0.0).astype(cdt)

    # layer 3 + tanh * max_action  (only the true action lanes — output is de-padded)
    a = jnp.dot(h2, w3_ref[...], preferred_element_type=jnp.float32) + b3_ref[...]
    o_ref[...] = (jnp.tanh(a) * max_action).astype(o_ref.dtype)


# ----------------------------------------------------------------------------- param prep (one-time)
def prepare_actor_params(params, *, compute_dtype=jnp.bfloat16,
                         hidden_multiple=256):
    """One-time pad+cast of the six parameter arrays.

    hidden_multiple: 256 for v6e/v7x (2x256x256 MXU); use 128 on v5e.
    Weights are cast to compute_dtype; biases stay f32 (added to f32 accumulator).
    Zero-padded hidden lanes stay exactly zero through relu, so numerics match.
    """
    w1, b1 = params["w1"], params["b1"]
    w2, b2 = params["w2"], params["b2"]
    w3, b3 = params["w3"], params["b3"]

    state_dim, hidden_dim = w1.shape
    action_dim = w3.shape[1]
    hd_p = _round_up(hidden_dim, hidden_multiple)

    def padw(w, rows, cols):
        w = w.astype(compute_dtype)
        return jnp.pad(w, ((0, rows - w.shape[0]), (0, cols - w.shape[1])))

    def padb(b, cols):
        b = jnp.reshape(b, (1, -1)).astype(jnp.float32)
        return jnp.pad(b, ((0, 0), (0, cols - b.shape[1])))

    return {
        "w1": padw(w1, state_dim, hd_p), "b1": padb(b1, hd_p),
        "w2": padw(w2, hd_p, hd_p),      "b2": padb(b2, hd_p),
        "w3": padw(w3, hd_p, action_dim), "b3": padb(b3, action_dim),
        "state_dim": state_dim,
        "hidden_dim": hidden_dim,
        "action_dim": action_dim,
        "compute_dtype": jnp.dtype(compute_dtype),
    }


# ----------------------------------------------------------------------------- forward
def actor_forward(state, prepared, max_action, *, block_b=1024, out_dtype=None):
    """state: (B, state_dim) f32. prepared: output of prepare_actor_params."""
    B, state_dim = state.shape
    assert state_dim == prepared["state_dim"], "state width mismatch"
    action_dim = prepared["action_dim"]
    hd_p = prepared["w1"].shape[1]
    cdt = prepared["compute_dtype"]
    out_dtype = state.dtype if out_dtype is None else jnp.dtype(out_dtype)

    # --- balanced batch tiling -------------------------------------------------
    block_b = max(8, block_b)
    # >= 2 grid steps once the batch is big enough so "parallel" can use both
    # TensorCores on v7x; otherwise a single balanced tile.
    num_tiles = max(_cdiv(B, block_b), 2 if B >= 512 else 1)
    tb = _round_up(_cdiv(B, num_tiles), 8)
    num_tiles = _cdiv(B, tb)
    B_p = num_tiles * tb

    x_p = state if B_p == B else jnp.pad(state, ((0, B_p - B), (0, 0)))
    ma = jnp.asarray([max_action], dtype=jnp.float32)

    # --- BlockSpecs --------------------------------------------------------------
    smem_spec = pl.BlockSpec(memory_space=pltpu.MemorySpace.SMEM)

    def _is_big(arr):
        return arr.size * arr.dtype.itemsize > (8 << 20)

    def resident_spec(arr):
        # Constant index_map -> DMA'd once, VMEM-resident across grid steps.
        # Single-buffer multi-MiB weights (they never change) to save VMEM on v7x.
        if _is_big(arr):
            return pl.BlockSpec(arr.shape, lambda i: (0, 0),
                                pipeline_mode=pl.Buffered(1))
        return pl.BlockSpec(arr.shape, lambda i: (0, 0))

    # --- VMEM budget: exact footprint + headroom, capped below v7x's 64 MiB ------
    cd_size = cdt.itemsize
    out_size = out_dtype.itemsize
    resident_bytes = sum(
        (1 if _is_big(prepared[k]) else 2) * prepared[k].size * prepared[k].dtype.itemsize
        for k in ("w1", "b1", "w2", "b2", "w3", "b3"))
    stream_bytes = (2 * tb * state_dim * state.dtype.itemsize    # double-buffered state tile
                    + 2 * tb * action_dim * out_size)            # double-buffered output tile
    interm_bytes = 2 * tb * hd_p * (4 + cd_size) + tb * action_dim * 4
    vmem_limit = int(min(max(resident_bytes + stream_bytes + interm_bytes + (4 << 20),
                             8 << 20), 48 << 20))

    out = pl.pallas_call(
        actor_kernel,
        out_shape=jax.ShapeDtypeStruct((B_p, action_dim), out_dtype),
        grid=(num_tiles,),
        in_specs=[
            smem_spec,                                           # max_action scalar (SMEM)
            pl.BlockSpec((tb, state_dim), lambda i: (i, 0)),     # streamed raw f32 state tile
            resident_spec(prepared["w1"]), resident_spec(prepared["b1"]),
            resident_spec(prepared["w2"]), resident_spec(prepared["b2"]),
            resident_spec(prepared["w3"]), resident_spec(prepared["b3"]),
        ],
        out_specs=pl.BlockSpec((tb, action_dim), lambda i: (i, 0)),
        compiler_params=pltpu.CompilerParams(
            dimension_semantics=("parallel",),
            vmem_limit_bytes=vmem_limit,
        ),
    )(ma, x_p, prepared["w1"], prepared["b1"], prepared["w2"], prepared["b2"],
      prepared["w3"], prepared["b3"])

    return out[:B] if B_p != B else out


def actor_forward_auto(state, prepared, max_action, *, min_pallas_batch=256,
                       raw_params=None, **kwargs):
    """For tiny batches the forward is launch-latency bound; let XLA fuse it."""
    if raw_params is not None and state.shape[0] < min_pallas_batch:
        return actor_reference(state, raw_params, max_action)
    return actor_forward(state, prepared, max_action, **kwargs)


# ----------------------------------------------------------------------------- reference & init
def actor_reference(state, params, max_action):
    h1 = jnp.maximum(state @ params["w1"] + params["b1"], 0.0)
    h2 = jnp.maximum(h1 @ params["w2"] + params["b2"], 0.0)
    return jnp.tanh(h2 @ params["w3"] + params["b3"]) * max_action


def init_params(key, state_dim, action_dim, hidden_dim):
    """Deterministic synthetic init (uniform, like PyTorch's default Linear init)."""
    keys = jax.random.split(key, 6)

    def linear(kw, kb, fan_in, fan_out):
        bound = 1.0 / jnp.sqrt(fan_in)
        # stored as (in, out) so the kernel does x @ W  (== PyTorch x @ W.T)
        w = jax.random.uniform(kw, (fan_in, fan_out), jnp.float32, -bound, bound)
        b = jax.random.uniform(kb, (1, fan_out), jnp.float32, -bound, bound)
        return w, b

    w1, b1 = linear(keys[0], keys[1], state_dim, hidden_dim)
    w2, b2 = linear(keys[2], keys[3], hidden_dim, hidden_dim)
    w3, b3 = linear(keys[4], keys[5], hidden_dim, action_dim)
    return {"w1": w1, "b1": b1, "w2": w2, "b2": b2, "w3": w3, "b3": b3}


# ----------------------------------------------------------------------------- main
if __name__ == "__main__":
    # Small shapes consistent with the module: batch=8, state_dim=16, hidden=32, action_dim=4
    B, state_dim, action_dim, hidden_dim = 8, 16, 4, 32
    max_action = 2.0

    key = jax.random.PRNGKey(0)
    k_state, k_params, k_big = jax.random.split(key, 3)
    state = jax.random.normal(k_state, (B, state_dim), jnp.float32)
    params = init_params(k_params, state_dim, action_dim, hidden_dim)
    ref = actor_reference(state, params, max_action)

    # 1) f32 compute path
    prep_f32 = prepare_actor_params(params, compute_dtype=jnp.float32)
    out_f32 = jax.block_until_ready(actor_forward(state, prep_f32, max_action))
    assert out_f32.shape == (B, action_dim)
    assert jnp.allclose(out_f32, ref, atol=1e-3, rtol=1e-3), "f32 mismatch vs reference"

    # 2) bf16 operands / f32 MXU accumulation (default prep, looser tolerance)
    prep_bf16 = prepare_actor_params(params)
    out_bf16 = jax.block_until_ready(actor_forward(state, prep_bf16, max_action))
    assert out_bf16.shape == (B, action_dim)
    assert jnp.allclose(out_bf16, ref, atol=5e-2, rtol=5e-2), "bf16 mismatch vs reference"
    assert bool(jnp.all(jnp.abs(out_bf16) <= max_action + 1e-3))

    # 3) non-tile-multiple batch with a multi-step grid (balanced tiles + pad/slice path)
    B2 = 300
    state2 = jax.random.normal(k_big, (B2, state_dim), jnp.float32)
    ref2 = actor_reference(state2, params, max_action)
    out2 = jax.block_until_ready(
        actor_forward(state2, prep_f32, max_action, block_b=128))
    assert out2.shape == (B2, action_dim)
    assert jnp.allclose(out2, ref2, atol=1e-3, rtol=1e-3), "grid-path mismatch"

    print("KERNEL_OK")
</pallas_src>

<mosaic_0001>
module attributes {stable_mosaic.version = 11 : i64} {
  func.func @actor_kernel(%arg0: i32, %arg1: memref<1xf32, #tpu.memory_space<smem>>, %arg2: memref<8x16xf32, #tpu.memory_space<vmem>>, %arg3: memref<16x256xf32, #tpu.memory_space<vmem>>, %arg4: memref<1x256xf32, #tpu.memory_space<vmem>>, %arg5: memref<256x256xf32, #tpu.memory_space<vmem>>, %arg6: memref<1x256xf32, #tpu.memory_space<vmem>>, %arg7: memref<256x4xf32, #tpu.memory_space<vmem>>, %arg8: memref<1x4xf32, #tpu.memory_space<vmem>>, %arg9: memref<8x4xf32, #tpu.memory_space<vmem>>) attributes {dimension_semantics = [#tpu.dimension_semantics<parallel>], iteration_bounds = array<i64: 1>, scalar_prefetch = 0 : i64, scratch_operands = 0 : i64, tpu.core_type = #tpu.core_type<tc>, window_params = [{transform_indices = @transform_0, window_bounds = array<i64: 1>}, {transform_indices = @transform_1, window_bounds = array<i64: 8, 16>}, {pipeline_mode = #tpu.pipeline_mode<synchronous>, transform_indices = @transform_2, window_bounds = array<i64: 16, 256>}, {pipeline_mode = #tpu.pipeline_mode<synchronous>, transform_indices = @transform_3, window_bounds = array<i64: 1, 256>}, {pipeline_mode = #tpu.pipeline_mode<synchronous>, transform_indices = @transform_4, window_bounds = array<i64: 256, 256>}, {pipeline_mode = #tpu.pipeline_mode<synchronous>, transform_indices = @transform_5, window_bounds = array<i64: 1, 256>}, {pipeline_mode = #tpu.pipeline_mode<synchronous>, transform_indices = @transform_6, window_bounds = array<i64: 256, 4>}, {pipeline_mode = #tpu.pipeline_mode<synchronous>, transform_indices = @transform_7, window_bounds = array<i64: 1, 4>}, {transform_indices = @transform_8, window_bounds = array<i64: 8, 4>}]} {
    %c0 = arith.constant 0 : index
    %0 = memref.load %arg1[%c0] : memref<1xf32, #tpu.memory_space<smem>>
    %c0_0 = arith.constant 0 : index
    %c0_1 = arith.constant 0 : index
    %1 = vector.load %arg2[%c0_0, %c0_1] : memref<8x16xf32, #tpu.memory_space<vmem>>, vector<8x16xf32>
    %c0_2 = arith.constant 0 : index
    %c0_3 = arith.constant 0 : index
    %2 = vector.load %arg3[%c0_2, %c0_3] : memref<16x256xf32, #tpu.memory_space<vmem>>, vector<16x256xf32>
    %cst = arith.constant dense<0.000000e+00> : vector<8x256xf32>
    %3 = tpu.matmul %1, %2, %cst {dimension_numbers = #tpu.dot_dimension_numbers<[1], [0], [0], [1], [0, 0, 1, 1], [], []>} : vector<8x16xf32>, vector<16x256xf32>, vector<8x256xf32> -> vector<8x256xf32>
    %c0_4 = arith.constant 0 : index
    %c0_5 = arith.constant 0 : index
    %4 = vector.load %arg4[%c0_4, %c0_5] : memref<1x256xf32, #tpu.memory_space<vmem>>, vector<1x256xf32>
    %5 = vector.broadcast %4 : vector<1x256xf32> to vector<8x256xf32>
    %6 = arith.addf %3, %5 : vector<8x256xf32>
    %cst_6 = arith.constant 0.000000e+00 : f32
    %7 = vector.broadcast %cst_6 : f32 to vector<8x256xf32>
    %8 = arith.maximumf %6, %7 : vector<8x256xf32>
    %c0_7 = arith.constant 0 : index
    %c0_8 = arith.constant 0 : index
    %9 = vector.load %arg5[%c0_7, %c0_8] : memref<256x256xf32, #tpu.memory_space<vmem>>, vector<256x256xf32>
    %cst_9 = arith.constant dense<0.000000e+00> : vector<8x256xf32>
    %10 = tpu.matmul %8, %9, %cst_9 {dimension_numbers = #tpu.dot_dimension_numbers<[1], [0], [0], [1], [0, 0, 1, 1], [], []>} : vector<8x256xf32>, vector<256x256xf32>, vector<8x256xf32> -> vector<8x256xf32>
    %c0_10 = arith.constant 0 : index
    %c0_11 = arith.constant 0 : index
    %11 = vector.load %arg6[%c0_10, %c0_11] : memref<1x256xf32, #tpu.memory_space<vmem>>, vector<1x256xf32>
    %12 = vector.broadcast %11 : vector<1x256xf32> to vector<8x256xf32>
    %13 = arith.addf %10, %12 : vector<8x256xf32>
    %cst_12 = arith.constant 0.000000e+00 : f32
    %14 = vector.broadcast %cst_12 : f32 to vector<8x256xf32>
    %15 = arith.maximumf %13, %14 : vector<8x256xf32>
    %c0_13 = arith.constant 0 : index
    %c0_14 = arith.constant 0 : index
    %16 = vector.load %arg7[%c0_13, %c0_14] : memref<256x4xf32, #tpu.memory_space<vmem>>, vector<256x4xf32>
    %cst_15 = arith.constant dense<0.000000e+00> : vector<8x4xf32>
    %17 = tpu.matmul %15, %16, %cst_15 {dimension_numbers = #tpu.dot_dimension_numbers<[1], [0], [0], [1], [0, 0, 1, 1], [], []>} : vector<8x256xf32>, vector<256x4xf32>, vector<8x4xf32> -> vector<8x4xf32>
    %c0_16 = arith.constant 0 : index
    %c0_17 = arith.constant 0 : index
    %18 = vector.load %arg8[%c0_16, %c0_17] : memref<1x4xf32, #tpu.memory_space<vmem>>, vector<1x4xf32>
    %19 = vector.broadcast %18 : vector<1x4xf32> to vector<8x4xf32>
    %20 = arith.addf %17, %19 : vector<8x4xf32>
    %21 = math.tanh %20 : vector<8x4xf32>
    %22 = vector.broadcast %0 : f32 to vector<8x4xf32>
    %23 = arith.mulf %21, %22 : vector<8x4xf32>
    %c0_18 = arith.constant 0 : index
    %c0_19 = arith.constant 0 : index
    %24 = vector.load %arg9[%c0_18, %c0_19] : memref<8x4xf32, #tpu.memory_space<vmem>>, vector<8x4xf32>
    tpu.vector_store %arg9[%c0_18, %c0_19], %23 {strides = array<i32>} : memref<8x4xf32, #tpu.memory_space<vmem>>, vector<8x4xf32>,
    return
  }
  func.func @transform_0(%arg0: i32) -> i32 {
    %c0_i32 = arith.constant 0 : i32
    %c0_i32_0 = arith.constant 0 : i32
    return %c0_i32 : i32
  }
  func.func @transform_1(%arg0: i32) -> (i32, i32) {
    %c0_i32 = arith.constant 0 : i32
    %c0_i32_0 = arith.constant 0 : i32
    return %arg0, %c0_i32 : i32, i32
  }
  func.func @transform_2(%arg0: i32) -> (i32, i32) {
    %c0_i32 = arith.constant 0 : i32
    %c0_i32_0 = arith.constant 0 : i32
    %c0_i32_1 = arith.constant 0 : i32
    return %c0_i32, %c0_i32_0 : i32, i32
  }
  func.func @transform_3(%arg0: i32) -> (i32, i32) {
    %c0_i32 = arith.constant 0 : i32
    %c0_i32_0 = arith.constant 0 : i32
    %c0_i32_1 = arith.constant 0 : i32
    return %c0_i32, %c0_i32_0 : i32, i32
  }
  func.func @transform_4(%arg0: i32) -> (i32, i32) {
    %c0_i32 = arith.constant 0 : i32
    %c0_i32_0 = arith.constant 0 : i32
    %c0_i32_1 = arith.constant 0 : i32
    return %c0_i32, %c0_i32_0 : i32, i32
  }
  func.func @transform_5(%arg0: i32) -> (i32, i32) {
    %c0_i32 = arith.constant 0 : i32
    %c0_i32_0 = arith.constant 0 : i32
    %c0_i32_1 = arith.constant 0 : i32
    return %c0_i32, %c0_i32_0 : i32, i32
  }
  func.func @transform_6(%arg0: i32) -> (i32, i32) {
    %c0_i32 = arith.constant 0 : i32
    %c0_i32_0 = arith.constant 0 : i32
    %c0_i32_1 = arith.constant 0 : i32
    return %c0_i32, %c0_i32_0 : i32, i32
  }
  func.func @transform_7(%arg0: i32) -> (i32, i32) {
    %c0_i32 = arith.constant 0 : i32
    %c0_i32_0 = arith.constant 0 : i32
    %c0_i32_1 = arith.constant 0 : i32
    return %c0_i32, %c0_i32_0 : i32, i32
  }
  func.func @transform_8(%arg0: i32) -> (i32, i32) {
    %c0_i32 = arith.constant 0 : i32
    %c0_i32_0 = arith.constant 0 : i32
    return %arg0, %c0_i32 : i32, i32
  }
}

</mosaic_0001>

<bundles_post_ra>
// kernel: tpu_custom_call.1
= control target key start
LH: loop header
LB: loop body
LE: loop exit
PB: predicated region body
PF: predicated region fallthrough
CT: control target
= control target key end

     0   :  { %14 = vsyncpa [#allocation4], 0  ;;  %s376_s30 = smov [#allocation3]   ;;  %s377_s10 = smov 256   ;;  %s553_s0 = inlined_call_operand.<no memory space> [shape: f32[1], index: 0, kind: input, shape index: {}]   ;;  %s554_s1 = inlined_call_operand.vmem [shape: f32[8,16], index: 1, kind: input, shape index: {}]   ;;  %s555_s2 = inlined_call_operand.vmem [shape: f32[16,256], index: 2, kind: input, shape index: {}]   ;;  %s556_s3 = inlined_call_operand.vmem [shape: f32[1,256], index: 3, kind: input, shape index: {}]   ;;  %s557_s4 = inlined_call_operand.hbm [shape: f32[256,256], index: 4, kind: input, shape index: {}]   ;;  %s558_s5 = inlined_call_operand.vmem [shape: f32[1,256], index: 5, kind: input, shape index: {}]   ;;  %s559_s6 = inlined_call_operand.vmem [shape: f32[256,4], index: 6, kind: input, shape index: {}]   ;;  %s560_s7 = inlined_call_operand.vmem [shape: f32[1,4], index: 7, kind: input, shape index: {}]   ;;  %s561_s8 = inlined_call_operand.vmem [shape: f32[8,4], index: 8, kind: output, shape index: {}]  }
   0x1   :  { %s27_s29 = sshll.u32 %s557_s4, 4  ;;  %s29_s9 = sshll.u32 %s376_s30, 4  ;;  %s28_s29 = int_to_ptr.hbm [resolvable:$true] %s27_s29  ;;  %s30_s9 = int_to_ptr.vmem [resolvable:$true] %s29_s9 }
   0x2   :  { %s378_s11 = smov 16  }
   0x3   :  { %35 = dma.hbm_to_vmem [thread:$0]  %s28_s29, 8192, %s30_s9, [#allocation4], %s377_s10, %s377_s10, %s378_s11  }
   0x4   :  { %374 = dma.done.wait [#allocation4], 8192  }
   0x5   :  { %375 = vsyncadd [#allocation4], 4294959104  ;;  %v50_v0 = vld [vmem:[%s555_s2 + $0x10] sm:$0xff]  ;;  %v48_v1 = vld [vmem:[%s555_s2] sm:$0xff]  ;;  %vm58_vm0 = vcmask 130048   ;;  %vm335_vm1 = vcmask 31744  }
   0x6   :  { %v51_v2 = vld [vmem:[%s555_s2 + $0x18] sm:$0xff]  ;;  %76 = vmatpush.msra.mxu0 %v50_v0  ;;  %v47_v3 = vld [vmem:[%s554_s1] sm:$0xff]  ;;  %v49_v4 = vld [vmem:[%s555_s2 + $0x8] sm:$0xff] }
   0x7   :  { %96 = vmatpush.msra.mxu1 %v51_v2  ;;  %v134_v5 = vld [vmem:[#allocation3 + $0xf0] sm:$0xff]  ;;  %v135_v6 = vld [vmem:[#allocation3 + $0xf8] sm:$0xff]  ;;  %v132_v7 = vld [vmem:[#allocation3 + $0xe0] sm:$0xff] }
   0x8   :  { %174 = vmatpush.msra.mxu2 %v134_v5  ;;  %77 = vmatpush.msra.mxu0 %v48_v1  ;;  %v166_v8 = vld [vmem:[#allocation3 + $0x1f0] sm:$0xff]  ;;  %v167_v9 = vld [vmem:[#allocation3 + $0x1f8] sm:$0xff]  ;;  %v133_v10 = vld [vmem:[#allocation3 + $0xe8] sm:$0xff] }
   0x9   :  { %97 = vmatpush.msra.mxu1 %v49_v4  ;;  %342 = vmatmul.msk.f32.vlgmr.msra.gmra.mxu0 %vm58_vm0, %v47_v3  ;;  %v130_v11 = vld [vmem:[#allocation3 + $0xd0] sm:$0xff]  ;;  %v164_v12 = vld [vmem:[#allocation3 + $0x1e0] sm:$0xff]  ;;  %v165_v13 = vld [vmem:[#allocation3 + $0x1e8] sm:$0xff] }
   0xa   :  { %343 = vmatmul.msk.f32.vlgmr.msra.gmra.mxu1 %vm58_vm0, %v47_v3  ;;  %214 = vmatpush.msrb.mxu0 %v135_v6  ;;  %v131_v14 = vld [vmem:[#allocation3 + $0xd8] sm:$0xff]  ;;  %v128_v15 = vld [vmem:[#allocation3 + $0xc0] sm:$0xff]  ;;  %v162_v16 = vld [vmem:[#allocation3 + $0x1d0] sm:$0xff] }
   0xb   :  { %175 = vmatpush.msra.mxu2 %v132_v7  ;;  %194 = vmatpush.msra.mxu3 %v166_v8  ;;  %v163_v17 = vld [vmem:[#allocation3 + $0x1d8] sm:$0xff]  ;;  %v129_v18 = vld [vmem:[#allocation3 + $0xc8] sm:$0xff]  ;;  %v126_v19 = vld [vmem:[#allocation3 + $0xb0] sm:$0xff] }
   0xc   :  { %234 = vmatpush.msrb.mxu1 %v167_v9  ;;  %215 = vmatpush.msrb.mxu0 %v133_v10  ;;  %v160_v20 = vld [vmem:[#allocation3 + $0x1c0] sm:$0xff]  ;;  %v161_v21 = vld [vmem:[#allocation3 + $0x1c8] sm:$0xff]  ;;  %v127_v22 = vld [vmem:[#allocation3 + $0xb8] sm:$0xff] }
   0xd   :  { %176 = vmatpush.msra.mxu2 %v130_v11  ;;  %195 = vmatpush.msra.mxu3 %v164_v12  ;;  %v124_v23 = vld [vmem:[#allocation3 + $0xa0] sm:$0xff]  ;;  %v158_v24 = vld [vmem:[#allocation3 + $0x1b0] sm:$0xff]  ;;  %v159_v25 = vld [vmem:[#allocation3 + $0x1b8] sm:$0xff] }
   0xe   :  { %235 = vmatpush.msrb.mxu1 %v165_v13  ;;  %216 = vmatpush.msrb.mxu0 %v131_v14  ;;  %v125_v26 = vld [vmem:[#allocation3 + $0xa8] sm:$0xff]  ;;  %v122_v27 = vld [vmem:[#allocation3 + $0x90] sm:$0xff]  ;;  %v156_v28 = vld [vmem:[#allocation3 + $0x1a0] sm:$0xff] }
   0xf   :  { %177 = vmatpush.msra.mxu2 %v128_v15  ;;  %196 = vmatpush.msra.mxu3 %v162_v16  ;;  %v157_v29 = vld [vmem:[#allocation3 + $0x1a8] sm:$0xff]  ;;  %v123_v30 = vld [vmem:[#allocation3 + $0x98] sm:$0xff]  ;;  %v120_v31 = vld [vmem:[#allocation3 + $0x80] sm:$0xff] }
  0x10   :  { %236 = vmatpush.msrb.mxu1 %v163_v17  ;;  %217 = vmatpush.msrb.mxu0 %v129_v18  ;;  %v154_v32 = vld [vmem:[#allocation3 + $0x190] sm:$0xff]  ;;  %v155_v33 = vld [vmem:[#allocation3 + $0x198] sm:$0xff]  ;;  %v121_v34 = vld [vmem:[#allocation3 + $0x88] sm:$0xff] }
  0x11   :  { %178 = vmatpush.msra.mxu2 %v126_v19  ;;  %197 = vmatpush.msra.mxu3 %v160_v20  ;;  %v118_v35 = vld [vmem:[#allocation3 + $0x70] sm:$0xff]  ;;  %v152_v36 = vld [vmem:[#allocation3 + $0x180] sm:$0xff]  ;;  %v153_v37 = vld [vmem:[#allocation3 + $0x188] sm:$0xff] }
  0x12   :  { %237 = vmatpush.msrb.mxu1 %v161_v21  ;;  %218 = vmatpush.msrb.mxu0 %v127_v22  ;;  %v119_v38 = vld [vmem:[#allocation3 + $0x78] sm:$0xff]  ;;  %v116_v39 = vld [vmem:[#allocation3 + $0x60] sm:$0xff]  ;;  %v150_v40 = vld [vmem:[#allocation3 + $0x170] sm:$0xff] }
  0x13   :  { %179 = vmatpush.msra.mxu2 %v124_v23  ;;  %198 = vmatpush.msra.mxu3 %v158_v24  ;;  %v151_v41 = vld [vmem:[#allocation3 + $0x178] sm:$0xff]  ;;  %v117_v42 = vld [vmem:[#allocation3 + $0x68] sm:$0xff]  ;;  %v114_v43 = vld [vmem:[#allocation3 + $0x50] sm:$0xff] }
  0x14   :  { %238 = vmatpush.msrb.mxu1 %v159_v25  ;;  %219 = vmatpush.msrb.mxu0 %v125_v26  ;;  %v148_v44 = vld [vmem:[#allocation3 + $0x160] sm:$0xff]  ;;  %v149_v45 = vld [vmem:[#allocation3 + $0x168] sm:$0xff]  ;;  %v115_v46 = vld [vmem:[#allocation3 + $0x58] sm:$0xff] }
  0x15   :  { %180 = vmatpush.msra.mxu2 %v122_v27  ;;  %199 = vmatpush.msra.mxu3 %v156_v28  ;;  %v112_v47 = vld [vmem:[#allocation3 + $0x40] sm:$0xff]  ;;  %v146_v48 = vld [vmem:[#allocation3 + $0x150] sm:$0xff]  ;;  %v147_v49 = vld [vmem:[#allocation3 + $0x158] sm:$0xff] }
  0x16   :  { %239 = vmatpush.msrb.mxu1 %v157_v29  ;;  %220 = vmatpush.msrb.mxu0 %v123_v30  ;;  %v113_v50 = vld [vmem:[#allocation3 + $0x48] sm:$0xff]  ;;  %v110_v51 = vld [vmem:[#allocation3 + $0x30] sm:$0xff]  ;;  %v144_v52 = vld [vmem:[#allocation3 + $0x140] sm:$0xff] }
  0x17   :  { %181 = vmatpush.msra.mxu2 %v120_v31  ;;  %200 = vmatpush.msra.mxu3 %v154_v32  ;;  %v145_v53 = vld [vmem:[#allocation3 + $0x148] sm:$0xff]  ;;  %v111_v54 = vld [vmem:[#allocation3 + $0x38] sm:$0xff]  ;;  %v108_v55 = vld [vmem:[#allocation3 + $0x20] sm:$0xff] }
  0x18   :  { %240 = vmatpush.msrb.mxu1 %v155_v33  ;;  %221 = vmatpush.msrb.mxu0 %v121_v34  ;;  %v142_v56 = vld [vmem:[#allocation3 + $0x130] sm:$0xff]  ;;  %v109_v57 = vld [vmem:[#allocation3 + $0x28] sm:$0xff]  ;;  %v143_v58 = vld [vmem:[#allocation3 + $0x138] sm:$0xff] }
  0x19   :  { %182 = vmatpush.msra.mxu2 %v118_v35  ;;  %201 = vmatpush.msra.mxu3 %v152_v36  ;;  %v106_v59 = vld [vmem:[#allocation3 + $0x10] sm:$0xff]  ;;  %v140_v60 = vld [vmem:[#allocation3 + $0x120] sm:$0xff]  ;;  %v107_v61 = vld [vmem:[#allocation3 + $0x18] sm:$0xff] }
  0x1a   :  { %241 = vmatpush.msrb.mxu1 %v153_v37  ;;  %222 = vmatpush.msrb.mxu0 %v119_v38  ;;  %v141_v62 = vld [vmem:[#allocation3 + $0x128] sm:$0xff]  ;;  %v104_v63 = vld [vmem:[#allocation3] sm:$0xff]  ;;  %v138_v0 = vld [vmem:[#allocation3 + $0x110] sm:$0xff] }
  0x1b   :  { %183 = vmatpush.msra.mxu2 %v116_v39  ;;  %202 = vmatpush.msra.mxu3 %v150_v40  ;;  %v105_v1 = vld [vmem:[#allocation3 + $0x8] sm:$0xff]  ;;  %v139_v2 = vld [vmem:[#allocation3 + $0x118] sm:$0xff]  ;;  %v136_v3 = vld [vmem:[#allocation3 + $0x100] sm:$0xff] }
  0x1c   :  { %242 = vmatpush.msrb.mxu1 %v151_v41  ;;  %223 = vmatpush.msrb.mxu0 %v117_v42  ;;  %v137_v4 = vld [vmem:[#allocation3 + $0x108] sm:$0xff]  ;;  %v287_v5 = vld [vmem:[%s559_s6 + $0xf8] sm:$0xff]  ;;  %v286_v6 = vld [vmem:[%s559_s6 + $0xf0] sm:$0xff] }
  0x1d   :  { %184 = vmatpush.msra.mxu2 %v114_v43  ;;  %203 = vmatpush.msra.mxu3 %v148_v44  ;;  %v271_v7 = vld [vmem:[%s559_s6 + $0x78] sm:$0xff]  ;;  %v270_v8 = vld [vmem:[%s559_s6 + $0x70] sm:$0xff]  ;;  %v285_v9 = vld [vmem:[%s559_s6 + $0xe8] sm:$0xff] }
  0x1e   :  { %243 = vmatpush.msrb.mxu1 %v149_v45  ;;  %224 = vmatpush.msrb.mxu0 %v115_v46  ;;  %v269_v10 = vld [vmem:[%s559_s6 + $0x68] sm:$0xff]  ;;  %v284_v11 = vld [vmem:[%s559_s6 + $0xe0] sm:$0xff]  ;;  %v283_v13 = vld [vmem:[%s559_s6 + $0xd8] sm:$0xff] }
  0x1f   :  { %185 = vmatpush.msra.mxu2 %v112_v47  ;;  %204 = vmatpush.msra.mxu3 %v146_v48  ;;  %v268_v12 = vld [vmem:[%s559_s6 + $0x60] sm:$0xff]  ;;  %v267_v14 = vld [vmem:[%s559_s6 + $0x58] sm:$0xff]  ;;  %v282_v15 = vld [vmem:[%s559_s6 + $0xd0] sm:$0xff] }
  0x20   :  { %244 = vmatpush.msrb.mxu1 %v147_v49  ;;  %225 = vmatpush.msrb.mxu0 %v113_v50  ;;  %v266_v16 = vld [vmem:[%s559_s6 + $0x50] sm:$0xff]  ;;  %v281_v17 = vld [vmem:[%s559_s6 + $0xc8] sm:$0xff]  ;;  %v280_v19 = vld [vmem:[%s559_s6 + $0xc0] sm:$0xff] }
  0x21   :  { %186 = vmatpush.msra.mxu2 %v110_v51  ;;  %205 = vmatpush.msra.mxu3 %v144_v52  ;;  %v265_v18 = vld [vmem:[%s559_s6 + $0x48] sm:$0xff]  ;;  %v264_v20 = vld [vmem:[%s559_s6 + $0x40] sm:$0xff]  ;;  %v279_v21 = vld [vmem:[%s559_s6 + $0xb8] sm:$0xff] }
  0x22   :  { %245 = vmatpush.msrb.mxu1 %v145_v53  ;;  %226 = vmatpush.msrb.mxu0 %v111_v54  ;;  %v263_v22 = vld [vmem:[%s559_s6 + $0x38] sm:$0xff]  ;;  %v278_v23 = vld [vmem:[%s559_s6 + $0xb0] sm:$0xff]  ;;  %v277_v24 = vld [vmem:[%s559_s6 + $0xa8] sm:$0xff] }
  0x23   :  { %187 = vmatpush.msra.mxu2 %v108_v55  ;;  %206 = vmatpush.msra.mxu3 %v142_v56  ;;  %v52_v25 = vld [vmem:[%s556_s3] sm:$0x3]  ;;  %v262_v35 = vld [vmem:[%s559_s6 + $0x30] sm:$0xff]  ;;  %v275_v36 = vld [vmem:[%s559_s6 + $0x98] sm:$0xff] }
  0x24   :  { %227 = vmatpush.msrb.mxu0 %v109_v57  ;;  %246 = vmatpush.msrb.mxu1 %v143_v58  ;;  %v276_v26 = vld [vmem:[%s559_s6 + $0xa0] sm:$0xff]  ;;  %v54_v27 = vperm.slane %v52_v25, 0  ;;  %v55_v28 = vperm.slane %v52_v25, 1  ;;  %v261_v37 = vld [vmem:[%s559_s6 + $0x28] sm:$0xff]  ;;  %v274_v38 = vld [vmem:[%s559_s6 + $0x90] sm:$0xff] }
  0x25   :  { %188 = vmatpush.msra.mxu2 %v106_v59  ;;  %207 = vmatpush.msra.mxu3 %v140_v60  ;;  %v260_v39 = vld [vmem:[%s559_s6 + $0x20] sm:$0xff]  ;;  %v273_v40 = vld [vmem:[%s559_s6 + $0x88] sm:$0xff]  ;;  %v259_v41 = vld [vmem:[%s559_s6 + $0x18] sm:$0xff] }
  0x26   :  { %228 = vmatpush.msrb.mxu0 %v107_v61  ;;  %247 = vmatpush.msrb.mxu1 %v141_v62  ;;  %v272_v42 = vld [vmem:[%s559_s6 + $0x80] sm:$0xff]  ;;  %v258_v43 = vld [vmem:[%s559_s6 + $0x10] sm:$0xff]  ;;  %v257_v44 = vld [vmem:[%s559_s6 + $0x8] sm:$0xff] }
  0x27   :  { %189 = vmatpush.msra.mxu2 %v104_v63  ;;  %208 = vmatpush.msra.mxu3 %v138_v0  ;;  %v256_v45 = vld [vmem:[%s559_s6] sm:$0xff]  ;;  %v333_v0 = vstv %s553_s0 }
  0x28   :  { %229 = vmatpush.msrb.mxu0 %v105_v1  ;;  %248 = vmatpush.msrb.mxu1 %v139_v2  ;;  %v168_v46 = vld [vmem:[%s558_s5] sm:$0x3] }
  0x29   :  { %209 = vmatpush.msra.mxu3 %v136_v3  ;;  %292 = vmatpush.msrb.mxu2 %v271_v7  ;;  %v171_v47 = vperm.slane %v168_v46, 1  ;;  %v170_v52 = vperm.slane %v168_v46, 0  ;;  %v347_v59 = vld [vmem:[%s560_s7] ss:$0 sm:$0xff] }
  0x2a   :  { %249 = vmatpush.msrb.mxu1 %v137_v4 }
  0x2b   :  { %312 = vmatpush.msrb.mxu3 %v287_v5  ;;  %293 = vmatpush.msrb.mxu2 %v270_v8 }
  0x2d   :  { %313 = vmatpush.msrb.mxu3 %v286_v6  ;;  %294 = vmatpush.msrb.mxu2 %v269_v10 }
  0x2f   :  { %314 = vmatpush.msrb.mxu3 %v285_v9  ;;  %295 = vmatpush.msrb.mxu2 %v268_v12 }
  0x31   :  { %315 = vmatpush.msrb.mxu3 %v284_v11  ;;  %296 = vmatpush.msrb.mxu2 %v267_v14 }
  0x33   :  { %316 = vmatpush.msrb.mxu3 %v283_v13  ;;  %297 = vmatpush.msrb.mxu2 %v266_v16 }
  0x35   :  { %317 = vmatpush.msrb.mxu3 %v282_v15  ;;  %298 = vmatpush.msrb.mxu2 %v265_v18 }
  0x37   :  { %318 = vmatpush.msrb.mxu3 %v281_v17  ;;  %299 = vmatpush.msrb.mxu2 %v264_v20 }
  0x39   :  { %319 = vmatpush.msrb.mxu3 %v280_v19  ;;  %300 = vmatpush.msrb.mxu2 %v263_v22 }
  0x3b   :  { %320 = vmatpush.msrb.mxu3 %v279_v21  ;;  %301 = vmatpush.msrb.mxu2 %v262_v35 }
  0x3d   :  { %321 = vmatpush.msrb.mxu3 %v278_v23  ;;  %302 = vmatpush.msrb.mxu2 %v261_v37 }
  0x3f   :  { %322 = vmatpush.msrb.mxu3 %v277_v24  ;;  %303 = vmatpush.msrb.mxu2 %v260_v39 }
  0x41   :  { %323 = vmatpush.msrb.mxu3 %v276_v26  ;;  %304 = vmatpush.msrb.mxu2 %v259_v41 }
  0x43   :  { %324 = vmatpush.msrb.mxu3 %v275_v36  ;;  %305 = vmatpush.msrb.mxu2 %v258_v43 }
  0x45   :  { %325 = vmatpush.msrb.mxu3 %v274_v38  ;;  %306 = vmatpush.msrb.mxu2 %v257_v44 }
  0x47   :  { %326 = vmatpush.msrb.mxu3 %v273_v40  ;;  %307 = vmatpush.msrb.mxu2 %v256_v45 }
  0x49   :  { %327 = vmatpush.msrb.mxu3 %v272_v42 }
  0x86   :  { %v79_v29 = vpop.f32.mrf.mxu0 }
  0x87   :  { %v99_v30 = vpop.f32.mrf.mxu1  ;;  %v80_v31 = vadd.f32 %v79_v29, %v54_v27 }
  0x88   :  { %v100_v32 = vadd.f32 %v99_v30, %v55_v28 }
  0x89   :  { %v102_v33 = vmax.f32 %v80_v31, 0.0 }
  0x8a   :  { %v103_v34 = vmax.f32 %v100_v32, 0.0 }
  0x8b   :  { %190 = vmatmul.f32.vlgmr.msra.gmra.mxu2 %v102_v33  ;;  %230 = vmatmul.f32.vlgmr.msrb.gmra.mxu0 %v102_v33 }
  0x8c   :  { %210 = vmatmul.f32.vlgmr.msra.gmra.mxu3 %v103_v34  ;;  %250 = vmatmul.f32.vlgmr.msrb.gmra.mxu1 %v103_v34 }
 0x108   :  { %v231_v48 = vpop.f32.mrf.mxu0 }
 0x109   :  { %v232_v49 = vadd.f32 %v231_v48, %v171_v47  ;;  %v251_v50 = vpop.f32.mrf.mxu1 }
 0x10b   :  { %v252_v51 = vadd.f32 %v251_v50, %v232_v49 }
 0x10d   :  { %v255_v53 = vmax.f32 %v252_v51, 0.0 }
 0x10e   :  { %v191_v54 = vpop.f32.mrf.mxu2 }
 0x10f   :  { %v192_v55 = vadd.f32 %v191_v54, %v170_v52  ;;  %328 = vmatmul.f32.vlgmr.msrb.gmra.mxu3 %v255_v53  ;;  %v211_v56 = vpop.f32.mrf.mxu3 }
 0x111   :  { %v212_v57 = vadd.f32 %v211_v56, %v192_v55 }
 0x113   :  { %v254_v58 = vmax.f32 %v212_v57, 0.0 }
 0x115   :  { %308 = vmatmul.f32.vlgmr.msrb.gmra.mxu2 %v254_v58 }
 0x192   :  { %v329_v62 = vpop.f32.mrf.mxu3 }
 0x198   :  { %v309_v60 = vpop.f32.mrf.mxu2 }
 0x199   :  { %v310_v61 = vadd.f32 %v347_v59, %v309_v60 }
 0x19b   :  { %v330_v63 = vadd.f32 %v329_v62, %v310_v61 }
 0x19d   :  { %348 = vtanh.f32 %v330_v63 }
 0x1a3   :  { %v349_v1 = vpop.eup %348 }
 0x1a4   :  { %v334_v2 = vmul.f32 %v349_v1, %v333_v0 }
 0x1a6   :  { %336 = vst.msk [vmem:[%s561_s8] sm:$0xff] %vm335_vm1, %v334_v2 }
 0x1a7   :  { %341 = vsyncpa [#allocation4], 1 }

</bundles_post_ra>
